<compile_context>
chip_gen: v5e
topology: v5e:2x2
jax: 0.10.0
libtpu: 0.0.40
codegen_flags: <defaults>
</compile_context>

<pallas_src>
import math
import functools

import jax
import jax.numpy as jnp
from jax.experimental import pallas as pl
from jax.experimental.pallas import tpu as pltpu


def _self_attn_kernel(xq_ref, xkv_ref, wq_ref, bq_ref, wkv_ref, bkv_ref,
                      wo_ref, bo_ref, gamma_ref, beta_ref, o_ref,
                      kh_ref, vh_ref, *, num_heads, head_dim, ln_eps):
    H, Dh = num_heads, head_dim
    E = H * Dh

    # ---- per-batch K/V projection, hoisted out of the q-tile loop -------------------
    # kh_ref / vh_ref persist across the q-tile ('arbitrary') axis; recomputed only when
    # a new batch row starts (program_id(1) == 0).
    @pl.when(pl.program_id(1) == 0)
    def _():
        x_kv = xkv_ref[0]                                                # (S, E) f32
        S = x_kv.shape[0]
        kv = jnp.dot(x_kv.astype(jnp.bfloat16), wkv_ref[...],
                     preferred_element_type=jnp.float32) + bkv_ref[0]    # (S, 2E) f32
        kv = kv.astype(jnp.bfloat16)      # cast BEFORE relayout: half the bytes moved
        kh_ref[...] = jnp.transpose(kv[:, :E].reshape(S, H, Dh), (1, 0, 2))  # (H,S,Dh)
        vh_ref[...] = jnp.transpose(kv[:, E:].reshape(S, H, Dh), (1, 0, 2))  # (H,S,Dh)

    x_q = xq_ref[0]                       # (tq, E) f32 -- query rows / residual input
    tq = x_q.shape[0]

    # ---- Q projection (1/sqrt(Dh) already folded into wq_t / bq at init) ------------
    q = jnp.dot(x_q.astype(jnp.bfloat16), wq_ref[...],
                preferred_element_type=jnp.float32) + bq_ref[0]          # (tq, E) f32
    qh = jnp.transpose(q.astype(jnp.bfloat16).reshape(tq, H, Dh), (1, 0, 2))  # (H,tq,Dh)

    # ---- head-batched attention (no per-head loop) -----------------------------------
    scores = jnp.einsum('hqd,hkd->hqk', qh, kh_ref[...],
                        preferred_element_type=jnp.float32)              # (H,tq,S) f32
    scores = scores - jnp.max(scores, axis=-1, keepdims=True)
    p = jnp.exp(scores)                   # f32 exp (v5e EUP has no bf16 path)
    p = p * pl.reciprocal(jnp.sum(p, axis=-1, keepdims=True), approx=True)

    ctx_h = jnp.einsum('hqk,hkd->hqd', p.astype(jnp.bfloat16), vh_ref[...],
                       preferred_element_type=jnp.float32)               # (H,tq,Dh) f32
    ctx = jnp.transpose(ctx_h.astype(jnp.bfloat16), (1, 0, 2)).reshape(tq, E)

    # ---- output projection + residual + LayerNorm (elementwise math in f32) ---------
    attn = jnp.dot(ctx, wo_ref[...], preferred_element_type=jnp.float32) + bo_ref[0]
    y = x_q + attn
    mean = jnp.mean(y, axis=-1, keepdims=True)
    c = y - mean
    var = jnp.mean(c * c, axis=-1, keepdims=True)
    y = c * jax.lax.rsqrt(var + ln_eps) * gamma_ref[0] + beta_ref[0]

    o_ref[0] = y.astype(o_ref.dtype)


def _chip_defaults():
    """Generation-aware (q_tile, scoped-VMEM-limit) defaults."""
    q_tile, vmem_limit = 256, 64 * 1024 * 1024            # v5e/v6e: 128 MiB physical VMEM
    try:
        cap = getattr(pltpu.get_tpu_info(), "vmem_capacity_bytes", None)
        if cap is not None and cap <= 64 * 1024 * 1024:   # v7x-class: 64 MiB per TC
            q_tile, vmem_limit = 128, 48 * 1024 * 1024
    except Exception:
        pass
    return q_tile, vmem_limit


def self_attention_layer(x, params, *, num_heads, q_tile=None, vmem_limit_bytes=None):
    """x: (B, S, E) float32. params: dict of weights (see init_params)."""
    B, S, E = x.shape
    head_dim = E // num_heads

    dflt_tile, dflt_vmem = _chip_defaults()
    if q_tile is None:
        q_tile = dflt_tile
    if vmem_limit_bytes is None:
        vmem_limit_bytes = dflt_vmem

    # Query-row tiling: pad S up to a multiple of q_tile (padded query rows attend to
    # the un-padded key sequence and are sliced off afterwards).
    if S <= q_tile:
        q_tile = S
    n_qt = pl.cdiv(S, q_tile)
    S_pad = n_qt * q_tile
    x_q = x if S_pad == S else jnp.pad(x, ((0, 0), (0, S_pad - S), (0, 0)))

    kernel = functools.partial(_self_attn_kernel,
                               num_heads=num_heads, head_dim=head_dim, ln_eps=1e-5)

    const2 = lambda b, qi: (0, 0)
    single = pl.Buffered(1)   # constant blocks: no double-buffering -> reclaims VMEM
    vec_spec = lambda n: pl.BlockSpec((1, n), const2, pipeline_mode=single)

    # Advisory cost estimate. x_kv is only DMA'd once per batch (constant block index
    # across q-tiles) and the K/V projection runs once per batch.
    flops = int(B * (4 * S * E * E            # fused K|V projection (once per batch)
                     + 4 * S_pad * E * E      # Q + output projections
                     + 4 * S_pad * S * E))    # QK^T + PV over all heads
    transcendentals = int(B * num_heads * S_pad * S + B * num_heads * S_pad + B * S_pad)
    w_bytes = (params["wq_t"].size + params["wkv_t"].size + params["wo_t"].size) * 2
    b_bytes = (params["bq"].size + params["bkv"].size + params["bo"].size
               + params["gamma"].size + params["beta"].size) * 4
    bytes_accessed = int(x_q.size * 4 + x.size * 4 + w_bytes + b_bytes + B * S_pad * E * 4)

    grid_spec = pltpu.PrefetchScalarGridSpec(
        num_scalar_prefetch=0,
        grid=(B, n_qt),
        in_specs=[
            pl.BlockSpec((1, q_tile, E), lambda b, qi: (b, qi, 0)),        # query-row tile
            pl.BlockSpec((1, S, E), lambda b, qi: (b, 0, 0),
                         pipeline_mode=single),                            # full seq (K/V)
            pl.BlockSpec((E, E), const2, pipeline_mode=single),            # wq_t  (bf16, pre-scaled)
            vec_spec(E),                                                   # bq    (f32, pre-scaled)
            pl.BlockSpec((E, 2 * E), const2, pipeline_mode=single),        # wkv_t (bf16)
            vec_spec(2 * E),                                               # bkv
            pl.BlockSpec((E, E), const2, pipeline_mode=single),            # wo_t  (bf16)
            vec_spec(E),                                                   # bo
            vec_spec(E),                                                   # gamma
            vec_spec(E),                                                   # beta
        ],
        out_specs=pl.BlockSpec((1, q_tile, E), lambda b, qi: (b, qi, 0)),
        scratch_shapes=[
            pltpu.VMEM((num_heads, S, head_dim), jnp.bfloat16),            # K, head-major
            pltpu.VMEM((num_heads, S, head_dim), jnp.bfloat16),            # V, head-major
        ],
    )

    out = pl.pallas_call(
        kernel,
        out_shape=jax.ShapeDtypeStruct((B, S_pad, E), x.dtype),
        grid_spec=grid_spec,
        compiler_params=pltpu.CompilerParams(
            # Batch stays 'parallel' (megacore sharding on v7x); the q-tile axis must be
            # 'arbitrary' because the kh/vh scratch state is carried across it.
            dimension_semantics=("parallel", "arbitrary"),
            vmem_limit_bytes=vmem_limit_bytes),
        cost_estimate=pl.CostEstimate(flops=flops,
                                      transcendentals=transcendentals,
                                      bytes_accessed=bytes_accessed),
    )(x_q, x,
      params["wq_t"], params["bq"],
      params["wkv_t"], params["bkv"],
      params["wo_t"], params["bo"],
      params["gamma"], params["beta"])

    return out if S_pad == S else out[:, :S, :]


def init_params(key, embed_dim, num_heads):
    """Deterministic synthetic init matching nn.MultiheadAttention + nn.LayerNorm shapes."""
    E = embed_dim
    Dh = E // num_heads
    k1, k2, k3 = jax.random.split(key, 3)
    # in_proj_weight: (3E, E) rows = [Wq; Wk; Wv]; in_proj_bias: (3E,)
    in_proj_w = jax.random.normal(k1, (3 * E, E), jnp.float32) * 0.05
    in_proj_b = jax.random.normal(k2, (3 * E,), jnp.float32) * 0.05
    out_w = jax.random.normal(k3, (E, E), jnp.float32) * 0.05
    out_b = jnp.zeros((E,), jnp.float32)
    gamma = jnp.ones((E,), jnp.float32)
    beta = jnp.zeros((E,), jnp.float32)

    # Pre-transpose so the kernel does y = x @ W_t + b (PyTorch does x @ W.T + b).
    # Fold 1/sqrt(Dh) into the Q projection (weight + bias) so the kernel never scales.
    # Fuse K|V into one (E, 2E) weight.  MXU weights are pre-cast to bf16 (halves weight
    # DMA / VMEM); biases and LayerNorm params stay f32.
    scale = 1.0 / math.sqrt(Dh)
    wq_t = (in_proj_w[:E].T * scale).astype(jnp.bfloat16)       # (E, E)
    bq = (in_proj_b[:E] * scale)[None, :]                       # (1, E) f32
    wkv_t = in_proj_w[E:].T.astype(jnp.bfloat16)                # (E, 2E) = [Wk.T | Wv.T]
    wo_t = out_w.T.astype(jnp.bfloat16)                         # (E, E)
    return {
        "wq_t": wq_t, "bq": bq,
        "wkv_t": wkv_t, "bkv": in_proj_b[E:][None, :],
        "wo_t": wo_t, "bo": out_b[None, :],
        "gamma": gamma[None, :], "beta": beta[None, :],
    }


def reference(x, params, *, num_heads):
    """Pure-JAX f32 reference replicating the PyTorch forward (eval mode).

    Note: 1/sqrt(Dh) is already folded into wq_t/bq, so no explicit score scaling here.
    """
    B, S, E = x.shape
    Dh = E // num_heads
    wq = params["wq_t"].astype(jnp.float32)
    wkv = params["wkv_t"].astype(jnp.float32)
    wo = params["wo_t"].astype(jnp.float32)

    q = x @ wq + params["bq"][0]
    kv = x @ wkv + params["bkv"][0]
    k, v = kv[..., :E], kv[..., E:]

    def split(t):  # (B,S,E) -> (B,H,S,Dh)
        return t.reshape(B, S, num_heads, Dh).transpose(0, 2, 1, 3)

    qh, kh, vh = split(q), split(k), split(v)
    scores = jnp.einsum("bhqd,bhkd->bhqk", qh, kh)
    p = jax.nn.softmax(scores, axis=-1)
    ctx = jnp.einsum("bhqk,bhkd->bhqd", p, vh).transpose(0, 2, 1, 3).reshape(B, S, E)
    attn_out = ctx @ wo + params["bo"][0]
    y = x + attn_out
    mean = jnp.mean(y, axis=-1, keepdims=True)
    var = jnp.mean((y - mean) ** 2, axis=-1, keepdims=True)
    y = (y - mean) * jax.lax.rsqrt(var + 1e-5)
    return y * params["gamma"][0] + params["beta"][0]


if __name__ == "__main__":
    B, S, E, H = 2, 8, 32, 4
    key = jax.random.PRNGKey(0)
    kx, kp = jax.random.split(key)
    x = jax.random.normal(kx, (B, S, E), jnp.float32)
    params = init_params(kp, E, H)

    out = jax.block_until_ready(self_attention_layer(x, params, num_heads=H))

    ref = reference(x, params, num_heads=H)
    assert out.shape == (B, S, E)
    max_err = float(jnp.max(jnp.abs(out - ref)))
    # bf16 MXU inputs + approx reciprocal -> 2e-2 tolerance.
    assert jnp.allclose(out, ref, atol=2e-2, rtol=2e-2), f"mismatch vs reference (max |err|={max_err})"

    print("KERNEL_OK")
</pallas_src>

<mosaic_0001>
module attributes {stable_mosaic.version = 11 : i64} {
  func.func @_self_attn_kernel(%arg0: i32, %arg1: i32, %arg2: memref<1x8x32xf32, #tpu.memory_space<vmem>>, %arg3: memref<1x8x32xf32, #tpu.memory_space<vmem>>, %arg4: memref<32x32xbf16, #tpu.memory_space<vmem>>, %arg5: memref<1x32xf32, #tpu.memory_space<vmem>>, %arg6: memref<32x64xbf16, #tpu.memory_space<vmem>>, %arg7: memref<1x64xf32, #tpu.memory_space<vmem>>, %arg8: memref<32x32xbf16, #tpu.memory_space<vmem>>, %arg9: memref<1x32xf32, #tpu.memory_space<vmem>>, %arg10: memref<1x32xf32, #tpu.memory_space<vmem>>, %arg11: memref<1x32xf32, #tpu.memory_space<vmem>>, %arg12: memref<1x8x32xf32, #tpu.memory_space<vmem>>, %arg13: memref<4x8x8xbf16, #tpu.memory_space<vmem>>, %arg14: memref<4x8x8xbf16, #tpu.memory_space<vmem>>) attributes {dimension_semantics = [#tpu.dimension_semantics<parallel>, #tpu.dimension_semantics<arbitrary>], iteration_bounds = array<i64: 2, 1>, scalar_prefetch = 0 : i64, scratch_operands = 2 : i64, tpu.core_type = #tpu.core_type<tc>, window_params = [{transform_indices = @transform_0, window_bounds = array<i64: 1, 8, 32>}, {pipeline_mode = #tpu.pipeline_mode<synchronous>, transform_indices = @transform_1, window_bounds = array<i64: 1, 8, 32>}, {pipeline_mode = #tpu.pipeline_mode<synchronous>, transform_indices = @transform_2, window_bounds = array<i64: 32, 32>}, {pipeline_mode = #tpu.pipeline_mode<synchronous>, transform_indices = @transform_3, window_bounds = array<i64: 1, 32>}, {pipeline_mode = #tpu.pipeline_mode<synchronous>, transform_indices = @transform_4, window_bounds = array<i64: 32, 64>}, {pipeline_mode = #tpu.pipeline_mode<synchronous>, transform_indices = @transform_5, window_bounds = array<i64: 1, 64>}, {pipeline_mode = #tpu.pipeline_mode<synchronous>, transform_indices = @transform_6, window_bounds = array<i64: 32, 32>}, {pipeline_mode = #tpu.pipeline_mode<synchronous>, transform_indices = @transform_7, window_bounds = array<i64: 1, 32>}, {pipeline_mode = #tpu.pipeline_mode<synchronous>, transform_indices = @transform_8, window_bounds = array<i64: 1, 32>}, {pipeline_mode = #tpu.pipeline_mode<synchronous>, transform_indices = @transform_9, window_bounds = array<i64: 1, 32>}, {transform_indices = @transform_10, window_bounds = array<i64: 1, 8, 32>}]} {
    %c0_i32 = arith.constant 0 : i32
    %0 = arith.cmpi eq, %arg1, %c0_i32 : i32
    %1 = arith.extui %0 : i1 to i32
    %c0_i32_0 = arith.constant 0 : i32
    %2 = arith.cmpi ne, %1, %c0_i32_0 : i32
    scf.if %2 {
      %c0_34 = arith.constant 0 : index
      %c0_35 = arith.constant 0 : index
      %c0_36 = arith.constant 0 : index
      %71 = vector.load %arg3[%c0_34, %c0_35, %c0_36] : memref<1x8x32xf32, #tpu.memory_space<vmem>>, vector<1x8x32xf32>
      %72 = vector.shape_cast %71 : vector<1x8x32xf32> to vector<8x32xf32>
      %73 = arith.truncf %72 : vector<8x32xf32> to vector<8x32xbf16>
      %c0_37 = arith.constant 0 : index
      %c0_38 = arith.constant 0 : index
      %74 = vector.load %arg6[%c0_37, %c0_38] : memref<32x64xbf16, #tpu.memory_space<vmem>>, vector<32x64xbf16>
      %cst_39 = arith.constant dense<0.000000e+00> : vector<8x64xf32>
      %75 = tpu.matmul %73, %74, %cst_39 {dimension_numbers = #tpu.dot_dimension_numbers<[1], [0], [0], [1], [0, 0, 1, 1], [], []>} : vector<8x32xbf16>, vector<32x64xbf16>, vector<8x64xf32> -> vector<8x64xf32>
      %c0_40 = arith.constant 0 : index
      %c0_41 = arith.constant 0 : index
      %76 = vector.load %arg7[%c0_40, %c0_41] : memref<1x64xf32, #tpu.memory_space<vmem>>, vector<1x64xf32>
      %77 = vector.shape_cast %76 : vector<1x64xf32> to vector<64xf32>
      %78 = vector.shape_cast %77 : vector<64xf32> to vector<1x64xf32>
      %79 = vector.broadcast %78 : vector<1x64xf32> to vector<8x64xf32>
      %80 = arith.addf %75, %79 : vector<8x64xf32>
      %81 = arith.truncf %80 : vector<8x64xf32> to vector<8x64xbf16>
      %82 = vector.extract_strided_slice %81 {offsets = [0, 0], sizes = [8, 32], strides = [1, 1]} : vector<8x64xbf16> to vector<8x32xbf16>
      %83 = vector.shape_cast %82 : vector<8x32xbf16> to vector<8x4x8xbf16>
      %84 = tpu.transpose %83, [1, 0, 2] : vector<8x4x8xbf16> -> vector<4x8x8xbf16>
      %c0_42 = arith.constant 0 : index
      %c0_43 = arith.constant 0 : index
      %c0_44 = arith.constant 0 : index
      %85 = vector.load %arg13[%c0_42, %c0_43, %c0_44] : memref<4x8x8xbf16, #tpu.memory_space<vmem>>, vector<4x8x8xbf16>
      tpu.vector_store %arg13[%c0_42, %c0_43, %c0_44], %84 {strides = array<i32>} : memref<4x8x8xbf16, #tpu.memory_space<vmem>>, vector<4x8x8xbf16>,
      %86 = vector.extract_strided_slice %81 {offsets = [0, 32], sizes = [8, 32], strides = [1, 1]} : vector<8x64xbf16> to vector<8x32xbf16>
      %87 = vector.shape_cast %86 : vector<8x32xbf16> to vector<8x4x8xbf16>
      %88 = tpu.transpose %87, [1, 0, 2] : vector<8x4x8xbf16> -> vector<4x8x8xbf16>
      %c0_45 = arith.constant 0 : index
      %c0_46 = arith.constant 0 : index
      %c0_47 = arith.constant 0 : index
      %89 = vector.load %arg14[%c0_45, %c0_46, %c0_47] : memref<4x8x8xbf16, #tpu.memory_space<vmem>>, vector<4x8x8xbf16>
      tpu.vector_store %arg14[%c0_45, %c0_46, %c0_47], %88 {strides = array<i32>} : memref<4x8x8xbf16, #tpu.memory_space<vmem>>, vector<4x8x8xbf16>,
    } else {
    }
    %c0 = arith.constant 0 : index
    %c0_1 = arith.constant 0 : index
    %c0_2 = arith.constant 0 : index
    %3 = vector.load %arg2[%c0, %c0_1, %c0_2] : memref<1x8x32xf32, #tpu.memory_space<vmem>>, vector<1x8x32xf32>
    %4 = vector.shape_cast %3 : vector<1x8x32xf32> to vector<8x32xf32>
    %5 = arith.truncf %4 : vector<8x32xf32> to vector<8x32xbf16>
    %c0_3 = arith.constant 0 : index
    %c0_4 = arith.constant 0 : index
    %6 = vector.load %arg4[%c0_3, %c0_4] : memref<32x32xbf16, #tpu.memory_space<vmem>>, vector<32x32xbf16>
    %cst = arith.constant dense<0.000000e+00> : vector<8x32xf32>
    %7 = tpu.matmul %5, %6, %cst {dimension_numbers = #tpu.dot_dimension_numbers<[1], [0], [0], [1], [0, 0, 1, 1], [], []>} : vector<8x32xbf16>, vector<32x32xbf16>, vector<8x32xf32> -> vector<8x32xf32>
    %c0_5 = arith.constant 0 : index
    %c0_6 = arith.constant 0 : index
    %8 = vector.load %arg5[%c0_5, %c0_6] : memref<1x32xf32, #tpu.memory_space<vmem>>, vector<1x32xf32>
    %9 = vector.shape_cast %8 : vector<1x32xf32> to vector<32xf32>
    %10 = vector.shape_cast %9 : vector<32xf32> to vector<1x32xf32>
    %11 = vector.broadcast %10 : vector<1x32xf32> to vector<8x32xf32>
    %12 = arith.addf %7, %11 : vector<8x32xf32>
    %13 = arith.truncf %12 : vector<8x32xf32> to vector<8x32xbf16>
    %14 = vector.shape_cast %13 : vector<8x32xbf16> to vector<8x4x8xbf16>
    %15 = tpu.transpose %14, [1, 0, 2] : vector<8x4x8xbf16> -> vector<4x8x8xbf16>
    %c0_7 = arith.constant 0 : index
    %c0_8 = arith.constant 0 : index
    %c0_9 = arith.constant 0 : index
    %16 = vector.load %arg13[%c0_7, %c0_8, %c0_9] : memref<4x8x8xbf16, #tpu.memory_space<vmem>>, vector<4x8x8xbf16>
    "tpu.trace_start"() <{level = 10 : i32, message = "hqd,hkd->hqk"}> : () -> ()
    %cst_10 = arith.constant dense<0.000000e+00> : vector<4x8x8xf32>
    %17 = tpu.matmul %15, %16, %cst_10 {dimension_numbers = #tpu.dot_dimension_numbers<[2], [2], [1], [1], [0, 0, 0, 1, 1, 1], [0], [0]>} : vector<4x8x8xbf16>, vector<4x8x8xbf16>, vector<4x8x8xf32> -> vector<4x8x8xf32>
    "tpu.trace_stop"() : () -> ()
    %cst_11 = arith.constant dense<0xFF800000> : vector<4x8xf32>
    %18 = vector.multi_reduction <maximumf>, %17, %cst_11 [2] : vector<4x8x8xf32> to vector<4x8xf32>
    %19 = vector.shape_cast %18 : vector<4x8xf32> to vector<4x8x1xf32>
    %20 = vector.broadcast %19 : vector<4x8x1xf32> to vector<4x8x8xf32>
    %21 = arith.subf %17, %20 : vector<4x8x8xf32>
    %22 = math.exp %21 : vector<4x8x8xf32>
    %cst_12 = arith.constant dense<0.000000e+00> : vector<4x8xf32>
    %23 = vector.multi_reduction <add>, %22, %cst_12 [2] : vector<4x8x8xf32> to vector<4x8xf32>
    %24 = vector.shape_cast %23 : vector<4x8xf32> to vector<4x8x1xf32>
    %25 = tpu.reciprocal %24 {approx = true} : vector<4x8x1xf32> -> vector<4x8x1xf32>
    %26 = vector.broadcast %25 : vector<4x8x1xf32> to vector<4x8x8xf32>
    %27 = arith.mulf %22, %26 : vector<4x8x8xf32>
    %28 = arith.truncf %27 : vector<4x8x8xf32> to vector<4x8x8xbf16>
    %c0_13 = arith.constant 0 : index
    %c0_14 = arith.constant 0 : index
    %c0_15 = arith.constant 0 : index
    %29 = vector.load %arg14[%c0_13, %c0_14, %c0_15] : memref<4x8x8xbf16, #tpu.memory_space<vmem>>, vector<4x8x8xbf16>
    "tpu.trace_start"() <{level = 10 : i32, message = "hqk,hkd->hqd"}> : () -> ()
    %cst_16 = arith.constant dense<0.000000e+00> : vector<4x8x8xf32>
    %30 = tpu.matmul %28, %29, %cst_16 {dimension_numbers = #tpu.dot_dimension_numbers<[2], [1], [1], [2], [0, 0, 0, 1, 1, 2], [0], [0]>} : vector<4x8x8xbf16>, vector<4x8x8xbf16>, vector<4x8x8xf32> -> vector<4x8x8xf32>
    "tpu.trace_stop"() : () -> ()
    %31 = arith.truncf %30 : vector<4x8x8xf32> to vector<4x8x8xbf16>
    %32 = tpu.transpose %31, [1, 0, 2] : vector<4x8x8xbf16> -> vector<8x4x8xbf16>
    %33 = vector.shape_cast %32 : vector<8x4x8xbf16> to vector<8x32xbf16>
    %c0_17 = arith.constant 0 : index
    %c0_18 = arith.constant 0 : index
    %34 = vector.load %arg8[%c0_17, %c0_18] : memref<32x32xbf16, #tpu.memory_space<vmem>>, vector<32x32xbf16>
    %cst_19 = arith.constant dense<0.000000e+00> : vector<8x32xf32>
    %35 = tpu.matmul %33, %34, %cst_19 {dimension_numbers = #tpu.dot_dimension_numbers<[1], [0], [0], [1], [0, 0, 1, 1], [], []>} : vector<8x32xbf16>, vector<32x32xbf16>, vector<8x32xf32> -> vector<8x32xf32>
    %c0_20 = arith.constant 0 : index
    %c0_21 = arith.constant 0 : index
    %36 = vector.load %arg9[%c0_20, %c0_21] : memref<1x32xf32, #tpu.memory_space<vmem>>, vector<1x32xf32>
    %37 = vector.shape_cast %36 : vector<1x32xf32> to vector<32xf32>
    %38 = vector.shape_cast %37 : vector<32xf32> to vector<1x32xf32>
    %39 = vector.broadcast %38 : vector<1x32xf32> to vector<8x32xf32>
    %40 = arith.addf %35, %39 : vector<8x32xf32>
    %41 = arith.addf %4, %40 : vector<8x32xf32>
    %cst_22 = arith.constant dense<0.000000e+00> : vector<8xf32>
    %42 = vector.multi_reduction <add>, %41, %cst_22 [1] : vector<8x32xf32> to vector<8xf32>
    %43 = vector.shape_cast %42 : vector<8xf32> to vector<8x1xf32>
    %cst_23 = arith.constant 3.200000e+01 : f32
    %44 = vector.broadcast %cst_23 : f32 to vector<8x1xf32>
    %45 = arith.divf %43, %44 : vector<8x1xf32>
    %46 = vector.broadcast %45 : vector<8x1xf32> to vector<8x32xf32>
    %47 = arith.subf %41, %46 : vector<8x32xf32>
    %48 = arith.mulf %47, %47 : vector<8x32xf32>
    %cst_24 = arith.constant dense<0.000000e+00> : vector<8xf32>
    %49 = vector.multi_reduction <add>, %48, %cst_24 [1] : vector<8x32xf32> to vector<8xf32>
    %50 = vector.shape_cast %49 : vector<8xf32> to vector<8x1xf32>
    %cst_25 = arith.constant 3.200000e+01 : f32
    %51 = vector.broadcast %cst_25 : f32 to vector<8x1xf32>
    %52 = arith.divf %50, %51 : vector<8x1xf32>
    %cst_26 = arith.constant 9.99999974E-6 : f32
    %53 = vector.broadcast %cst_26 : f32 to vector<8x1xf32>
    %54 = arith.addf %52, %53 : vector<8x1xf32>
    %55 = math.rsqrt %54 : vector<8x1xf32>
    %56 = vector.broadcast %55 : vector<8x1xf32> to vector<8x32xf32>
    %57 = arith.mulf %47, %56 : vector<8x32xf32>
    %c0_27 = arith.constant 0 : index
    %c0_28 = arith.constant 0 : index
    %58 = vector.load %arg10[%c0_27, %c0_28] : memref<1x32xf32, #tpu.memory_space<vmem>>, vector<1x32xf32>
    %59 = vector.shape_cast %58 : vector<1x32xf32> to vector<32xf32>
    %60 = vector.shape_cast %59 : vector<32xf32> to vector<1x32xf32>
    %61 = vector.broadcast %60 : vector<1x32xf32> to vector<8x32xf32>
    %62 = arith.mulf %57, %61 : vector<8x32xf32>
    %c0_29 = arith.constant 0 : index
    %c0_30 = arith.constant 0 : index
    %63 = vector.load %arg11[%c0_29, %c0_30] : memref<1x32xf32, #tpu.memory_space<vmem>>, vector<1x32xf32>
    %64 = vector.shape_cast %63 : vector<1x32xf32> to vector<32xf32>
    %65 = vector.shape_cast %64 : vector<32xf32> to vector<1x32xf32>
    %66 = vector.broadcast %65 : vector<1x32xf32> to vector<8x32xf32>
    %67 = arith.addf %62, %66 : vector<8x32xf32>
    %c0_31 = arith.constant 0 : index
    %c0_32 = arith.constant 0 : index
    %c0_33 = arith.constant 0 : index
    %68 = vector.load %arg12[%c0_31, %c0_32, %c0_33] : memref<1x8x32xf32, #tpu.memory_space<vmem>>, vector<1x8x32xf32>
    %69 = vector.shape_cast %68 : vector<1x8x32xf32> to vector<8x32xf32>
    %70 = vector.shape_cast %67 : vector<8x32xf32> to vector<1x8x32xf32>
    tpu.vector_store %arg12[%c0_31, %c0_32, %c0_33], %70 {strides = array<i32>} : memref<1x8x32xf32, #tpu.memory_space<vmem>>, vector<1x8x32xf32>,
    return
  }
  func.func @transform_0(%arg0: i32, %arg1: i32) -> (i32, i32, i32) {
    %c0_i32 = arith.constant 0 : i32
    %c0_i32_0 = arith.constant 0 : i32
    return %arg0, %arg1, %c0_i32 : i32, i32, i32
  }
  func.func @transform_1(%arg0: i32, %arg1: i32) -> (i32, i32, i32) {
    %c0_i32 = arith.constant 0 : i32
    %c0_i32_0 = arith.constant 0 : i32
    %c0_i32_1 = arith.constant 0 : i32
    return %arg0, %c0_i32, %c0_i32_0 : i32, i32, i32
  }
  func.func @transform_2(%arg0: i32, %arg1: i32) -> (i32, i32) {
    %c0_i32 = arith.constant 0 : i32
    %c0_i32_0 = arith.constant 0 : i32
    %c0_i32_1 = arith.constant 0 : i32
    return %c0_i32, %c0_i32_0 : i32, i32
  }
  func.func @transform_3(%arg0: i32, %arg1: i32) -> (i32, i32) {
    %c0_i32 = arith.constant 0 : i32
    %c0_i32_0 = arith.constant 0 : i32
    %c0_i32_1 = arith.constant 0 : i32
    return %c0_i32, %c0_i32_0 : i32, i32
  }
  func.func @transform_4(%arg0: i32, %arg1: i32) -> (i32, i32) {
    %c0_i32 = arith.constant 0 : i32
    %c0_i32_0 = arith.constant 0 : i32
    %c0_i32_1 = arith.constant 0 : i32
    return %c0_i32, %c0_i32_0 : i32, i32
  }
  func.func @transform_5(%arg0: i32, %arg1: i32) -> (i32, i32) {
    %c0_i32 = arith.constant 0 : i32
    %c0_i32_0 = arith.constant 0 : i32
    %c0_i32_1 = arith.constant 0 : i32
    return %c0_i32, %c0_i32_0 : i32, i32
  }
  func.func @transform_6(%arg0: i32, %arg1: i32) -> (i32, i32) {
    %c0_i32 = arith.constant 0 : i32
    %c0_i32_0 = arith.constant 0 : i32
    %c0_i32_1 = arith.constant 0 : i32
    return %c0_i32, %c0_i32_0 : i32, i32
  }
  func.func @transform_7(%arg0: i32, %arg1: i32) -> (i32, i32) {
    %c0_i32 = arith.constant 0 : i32
    %c0_i32_0 = arith.constant 0 : i32
    %c0_i32_1 = arith.constant 0 : i32
    return %c0_i32, %c0_i32_0 : i32, i32
  }
  func.func @transform_8(%arg0: i32, %arg1: i32) -> (i32, i32) {
    %c0_i32 = arith.constant 0 : i32
    %c0_i32_0 = arith.constant 0 : i32
    %c0_i32_1 = arith.constant 0 : i32
    return %c0_i32, %c0_i32_0 : i32, i32
  }
  func.func @transform_9(%arg0: i32, %arg1: i32) -> (i32, i32) {
    %c0_i32 = arith.constant 0 : i32
    %c0_i32_0 = arith.constant 0 : i32
    %c0_i32_1 = arith.constant 0 : i32
    return %c0_i32, %c0_i32_0 : i32, i32
  }
  func.func @transform_10(%arg0: i32, %arg1: i32) -> (i32, i32, i32) {
    %c0_i32 = arith.constant 0 : i32
    %c0_i32_0 = arith.constant 0 : i32
    return %arg0, %arg1, %c0_i32 : i32, i32, i32
  }
}

</mosaic_0001>

<bundles_post_ra>
// kernel: tpu_custom_call.1
= control target key start
LH: loop header
LB: loop body
LE: loop exit
PB: predicated region body
PF: predicated region fallthrough
CT: control target
= control target key end

     0   :  { %s2417_s0 = inlined_call_operand.hbm [shape: f32[2,8,32], index: 0, kind: input, shape index: {}]   ;;  %s2418_s1 = inlined_call_operand.hbm [shape: f32[2,8,32], index: 1, kind: input, shape index: {}]   ;;  %s2419_s2 = inlined_call_operand.hbm [shape: bf16[32,32], index: 2, kind: input, shape index: {}]   ;;  %s2420_s3 = inlined_call_operand.vmem [shape: f32[1,32], index: 3, kind: input, shape index: {}]   ;;  %s2421_s4 = inlined_call_operand.hbm [shape: bf16[32,64], index: 4, kind: input, shape index: {}]   ;;  %s2422_s5 = inlined_call_operand.vmem [shape: f32[1,64], index: 5, kind: input, shape index: {}]   ;;  %s2423_s6 = inlined_call_operand.hbm [shape: bf16[32,32], index: 6, kind: input, shape index: {}]   ;;  %s2424_s7 = inlined_call_operand.vmem [shape: f32[1,32], index: 7, kind: input, shape index: {}]   ;;  %s2425_s8 = inlined_call_operand.vmem [shape: f32[1,32], index: 8, kind: input, shape index: {}]   ;;  %s2426_s9 = inlined_call_operand.vmem [shape: f32[1,32], index: 9, kind: input, shape index: {}]   ;;  %s2427_s10 = inlined_call_operand.hbm [shape: f32[2,8,32], index: 10, kind: output, shape index: {}]  }
   0x1   :  { %2434 = sst [smem:[#allocation22_spill]] %s2417_s0 }
   0x2   :  { %2435 = sst [smem:[#allocation23_spill]] %s2418_s1 }
   0x3   :  { %2436 = sst [smem:[#allocation24_spill]] %s2425_s8 }
   0x4   :  { %2437 = sst [smem:[#allocation25_spill]] %s2426_s9 }
   0x5   :  { %2438 = sst [smem:[#allocation26_spill]] %s2427_s10 }
   0x6   :  { %15 = vsyncpa [#allocation5], 0 }
   0x7   :  { %17 = vsyncpa [#allocation5 + $0x1], 0 }
   0x8   :  { %18 = vsyncpa [#allocation8], 0 }
   0x9   :  { %19 = vsyncpa [#allocation11], 0 }
   0xa   :  { %20 = vsyncpa [#allocation6], 0 }
   0xb   :  { %22 = vsyncpa [#allocation6 + $0x1], 0  ;;  %s2009_s13 = smov 0   ;;  %s2011_s14 = smov 0  }
   0xc   :  { %s2013_s15 = smov 0   ;;  %s2015_s16 = smov 0  }
   0xd   :  { %s2017_s17 = smov 0   ;;  %s2019_s18 = smov 0  }
   0xe LB: > { %2439 = sst [smem:[#allocation19_spill]] %s1916_s13  ;;  %s2429_s19 = sadd.s32 4294967295, %s1936_s18   ;;  %s1936_s18 = sphi %s2019_s18, %s28_s18   ;;  %s1932_s17 = sphi %s2017_s17, %s2465_s17   ;;  %s1928_s16 = sphi %s2015_s16, %s2464_s16   ;;  %s1924_s15 = sphi %s2013_s15, %s2463_s15   ;;  %s1920_s14 = sphi %s2011_s14, %s2462_s14   ;;  %s1916_s13 = sphi %s2009_s13, %s2461_s13  }
   0xf   : > { %2440 = sst [smem:[#allocation20_spill]] %s1928_s16  ;;  %s1496_s20 = sadd.s32 4294967294, %s1936_s18  }
  0x10   : > { %p62_p0 = scmp.ne.s32.totalorder %s1920_s14, %s1916_s13  ;;  %p2045_p1 = scmp.eq.s32.totalorder %s2429_s19, 0 }
  0x11   : > { %p288_p2 = scmp.eq.s32.totalorder %s1496_s20, 1  ;;  %p1497_p4 = scmp.ge.s32.totalorder %s1936_s18, 1 }
  0x12   : > { %p2051_p3 = por %p2045_p1, %p62_p0  ;;  %p295_p6 = scmp.lt.s32.totalorder %s1936_s18, 3 }
  0x13   : > { %p2056_p5 = por %p288_p2, %p62_p0  ;;  %s2428_s24 = sshll.u32 %s1928_s16, 3 }
  0x14   : > { %p2062_p7 = pnand %p1497_p4, %p295_p6  ;;  %s2446_s1 = sld [smem:[#allocation23_spill]] }
  0x15   : > { %s2443_s23 = scalar_select %p2056_p5, 1, 0 }
  0x16   : > { %s1938_s30 = smov [#allocation7]   ;;  %p1574_p8 = pneg %p2062_p7 }
  0x17   : > { %2444 = sst [smem:[#allocation21_spill]] %s2443_s23  ;;  %s311_s11 = sshll.u32 %s1938_s30, 4  ;;  %s312_s11 = int_to_ptr.vmem [resolvable:$true] %s311_s11 }
  0x18   : > { %p2075_p9 = pnand %p1574_p8, %p2051_p3  ;;  %p2081_p10 = pnand %p1574_p8, %p2045_p1 }
  0x19   : > { %p1502_p11 = scmp.ge.s32.totalorder %s1936_s18, 2 }
  0x1a   : > { %s307_s28 = scalar_lea.hbm %s2446_s1, %s2428_s24  ;;  %p1696_p13 = pneg %p2075_p9 }
  0x1b   : > { %s309_s29 = sshll.u32 %s307_s28, 4  ;;  %s1699_s24 = scalar_lea.hbm %s2446_s1, 16  ;;  %s310_s29 = int_to_ptr.hbm [resolvable:$true] %s309_s29 }
  0x1c   : > { %s1692_s26 = sshra.s32 %s310_s29, 4  ;;  %s1693_s26 = int_to_ptr.hbm [resolvable:$true] %s1692_s26 }
  0x1d   : > { %s1694_s27 = scalar_lea.hbm %s1693_s26, 8  ;;  %p1700_p4 = scmp.lt.s32.totalorder %s1693_s26, %s2446_s1 }
  0x1e   : > { %p1695_p12 = scmp.ne.s32.totalorder %s1693_s26, %s1694_s27  ;;  %p1701_p6 = scmp.lt.s32.totalorder %s1699_s24, %s1694_s27 }
  0x20   : > { %p1697_p0 = pnand %p1696_p13, %p1695_p12  ;;  %p1702_p8 = por %p1701_p6, %p1700_p4 }
  0x22   : > { %p1698_p2 = pneg %p1697_p0 }
  0x24   : > { %p1703_p5 = pnand %p1702_p8, %p1698_p2 }
  0x26   : > { %1706 = shalt.err (!%p1703_p5)
}
  0x27   : > { %1577 = dma.hbm_to_vmem [thread:$0]  (!%p2075_p9), %s310_s29, 128, %s312_s11, [#allocation8]  }
  0x28   : > { %s337_s10 = sshll.u32 %s2421_s4, 4  ;;  %s1939_s28 = smov [#allocation10]   ;;  %s338_s10 = int_to_ptr.hbm [resolvable:$true] %s337_s10 }
  0x29   : > { %s339_s30 = sshll.u32 %s1939_s28, 4  ;;  %s320_s19 = sshll.u32 %s2419_s2, 4  ;;  %s340_s30 = int_to_ptr.vmem [resolvable:$true] %s339_s30  ;;  %s321_s19 = int_to_ptr.hbm [resolvable:$true] %s320_s19 }
  0x2a   : > { %s1940_s23 = smov 64   ;;  %s1941_s24 = smov 4  }
  0x2b   : > { %1583 = dma.hbm_to_vmem [thread:$0]  (!%p2081_p10), %s338_s10, 256, %s340_s30, [#allocation11], %s1940_s23, %s1940_s23, %s1941_s24  }
  0x2c   : > { %s354_s29 = sshll.u32 %s2423_s6, 4  ;;  %s1942_s11 = smov [#allocation9]   ;;  %s355_s29 = int_to_ptr.hbm [resolvable:$true] %s354_s29 }
  0x2d   : > { %s322_s8 = sshll.u32 %s1942_s11, 4  ;;  %s1943_s16 = smov [#allocation12]   ;;  %s323_s8 = int_to_ptr.vmem [resolvable:$true] %s322_s8 }
  0x2e   : > { %1580 = dma.hbm_to_vmem [thread:$0]  (!%p2081_p10), %s321_s19, 256, %s323_s8, [#allocation8], %s1940_s23, %s1940_s23, %s1941_s24  }
  0x2f   : > { %s356_s12 = sshll.u32 %s1943_s16, 4  ;;  %s2449_s10 = sadd.s32 4294967295, %s1936_s18   ;;  %s357_s12 = int_to_ptr.vmem [resolvable:$true] %s356_s12 }
  0x30   : > { %1586 = dma.hbm_to_vmem [thread:$0]  (!%p2081_p10), %s355_s29, 256, %s357_s12, [#allocation11], %s1940_s23, %s1940_s23, %s1941_s24  }
  0x31   : > { %p282_p5 = scmp.eq.s32.totalorder %s2449_s10, 1  ;;  %s40_s26 = sadd.s32 1, %s1932_s17 }
  0x32   : > { %p42_p9 = scmp.ge.s32.totalorder %s40_s26, 2  ;;  %s49_s27 = sadd.s32 1, %s1924_s15 }
  0x33   : > { %p56_p12 = scmp.ne.s32.totalorder %s1924_s15, %s1920_s14  ;;  %p57_p13 = scmp.eq.s32.totalorder %s1936_s18, 0 }
  0x34   : > { %s2467_s26 = smov (%p42_p9, %s40_s26), 0  ;;  %p1598_p2 = scmp.lt.s32.totalorder %s1936_s18, 2 }
  0x35   : > { %p2120_p0 = por %p282_p5, %p56_p12  ;;  %s44_s20 = ssub.s32 %s1932_s17, %s2467_s26 }
  0x36   : > { %s379_s30 = sand.u32 1, %s1924_s15   ;;  %p47_p10 = scmp.eq.s32.totalorder %s44_s20, 0 }
  0x37   : > { %p58_p4 = por %p57_p13, %p56_p12  ;;  %s1503_s19 = sshll.u32 %s379_s30, 3 }
  0x38   : > { %s1504_s23 = sshll.u32 %s1932_s17, 3  ;;  %s2451_s0 = sld [smem:[#allocation22_spill]] }
  0x39   : > { %s2130_s24 = scalar_select %p47_p10, %s1924_s15, %s49_s27  }
  0x3a   : > { %s383_s8 = scalar_lea.vmem [#allocation4], %s1503_s19  ;;  %p1588_p6 = pnand %p1598_p2, %p58_p4 }
  0x3b   : > { %s392_s16 = sshll.u32 %s383_s8, 4  ;;  %s380_s12 = scalar_lea.sflag [#allocation5], %s379_s30  ;;  %s393_s16 = int_to_ptr.vmem [resolvable:$true] %s392_s16 }
  0x3c   : > { %401 = sbr.rel (%p2062_p7) target bundleno = 1458 (0x5b2), region = 60  ;;  %s2140_s10 = sand.u32 (!%p2062_p7), 1, %s1920_s14  }
  0x3d   : > { %s1506_s27 = sshll.u32 (!%p2062_p7), %s2140_s10, 3  ;;  %s404_s20 = scalar_lea.sflag (!%p2062_p7), [#allocation5], %s2140_s10 }
  0x3e   : > { %s388_s29 = scalar_lea.hbm %s2451_s0, %s1504_s23  ;;  %s407_s19 = scalar_lea.vmem (!%p2062_p7), [#allocation4], %s1506_s27 }
  0x3f   : > { %s390_s11 = sshll.u32 %s388_s29, 4  ;;  %s391_s11 = int_to_ptr.hbm [resolvable:$true] %s390_s11 }
  0x40   : > { %1590 = dma.hbm_to_vmem [thread:$0]  (!%p1588_p6), %s391_s11, 128, %s393_s16, %s380_s12  }
  0x41   : > { %1895 = dma.done.wait (%p2051_p3), %s404_s20, 128  }
  0x42   : > { %1897 = vsyncadd (%p2051_p3), %s404_s20, 4294967168 }
  0x43   : > { %1899 = dma.done.wait (%p2051_p3), [#allocation8], 128  }
  0x44   : > { %1901 = vsyncadd (%p2051_p3), [#allocation8], 4294967168 }
  0x45   : > { %1903 = dma.done.wait (%p2045_p1), [#allocation8], 256  }
  0x46   : > { %1905 = vsyncadd (%p2045_p1), [#allocation8], 4294967040 }
  0x47   : > { %1907 = dma.done.wait (%p2045_p1), [#allocation11], 512  }
  0x48   : > { %1909 = vsyncadd (%p2045_p1), [#allocation11], 4294966784  ;;  %v1551_v0 = vld [vmem:[#allocation10 + $0x8] sm:$0xff]  ;;  %v1550_v1 = vld [vmem:[#allocation10] sm:$0xff]  ;;  %vm492_vm0 = vcmask 261120   ;;  %s1944_s23 = smov 104  }
  0x49   : > { %v470_v2 = vld [vmem:[#allocation7] sm:$0xff]  ;;  %v1553_v3 = vld [vmem:[#allocation9 + $0x8] sm:$0xff]  ;;  %v1552_v4 = vld [vmem:[#allocation9] sm:$0xff]  ;;  %502 = vmatpush.bf16.msra.mxu0 %v1551_v0  ;;  %s1945_s9 = smov 120   ;;  %s1946_s13 = smov 112   ;;  %vm540_vm1 = vcmask 1047556  }
  0x4a   : > { %v2162_v5 = vld [vmem:[%s407_s19] sm:$0xff]  ;;  %803 = vmatpush.bf16.msra.mxu1 %v1553_v3  ;;  %v471_v6 = vpack.c.bf16 %v470_v2, %v470_v2  ;;  %s1947_s29 = smov 96   ;;  %v1948_v24 = vmov 1983009808   ;;  %v1949_v37 = vmov 1934713408  }
  0x4b   : > { %v772_v7 = vpack.c.bf16 %v2162_v5, %v2162_v5  ;;  %v1667_v8 = vld [vmem:[%s2422_s5] ss:$0 sm:$0xff]  ;;  %v531_v25 = vunpack.c.l.s4 %v1948_v24  ;;  %v545_v38 = vunpack.c.l.s4 %v1949_v37  ;;  %vm636_vm2 = vcmask 60416   ;;  %s1950_s11 = smov 8   ;;  %s1951_s8 = smov 16  }
  0x4c   : > { %v1668_v9 = vld [vmem:[%s2420_s3] ss:$0 sm:$0xff]  ;;  %vm937_vm3 = vcmask 64512   ;;  %vm1069_vm4 = vcmask 1043456   ;;  %s1952_s16 = smov 24   ;;  %vm1276_vm5 = vcmask 130048  }
  0x4d   : > { %503 = vmatpush.bf16.msra.mxu0 %v1550_v1  ;;  %v2181_v30 = vunpack.c.0.s8 %v531_v25  ;;  %v2195_v52 = vunpack.c.0.s8 %v545_v38  ;;  %vm1279_vm6 = vcmask 195584   ;;  %s2452_s19 = sld [smem:[#allocation20_spill]]  ;;  %s464_s20 = scalar_lea.vmem [#allocation13], %s1506_s27 }
  0x4e   : > { %804 = vmatpush.bf16.msra.mxu1 %v1552_v4  ;;  %s2453_s25 = sld [smem:[#allocation24_spill]]  ;;  %s1372_s0 = sshll.u32 %s464_s20, 4  ;;  %s1373_s0 = int_to_ptr.vmem [resolvable:$true] %s1372_s0 }
  0x4f   : > { %s2457_s12 = sld [smem:[#allocation25_spill]] }
  0x50   : > { %1519 = vmatmul.msk.bf16.vlgmr.msra.gmra.mxu0 %vm492_vm0, %v471_v6 }
  0x51   : > { %1528 = vmatmul.msk.bf16.vlgmr.msra.gmra.mxu1 %vm492_vm0, %v772_v7 }
  0x53   : > { %s2454_s30 = sshll.u32 %s2452_s19, 3  ;;  %s1359_s19 = scalar_lea.sflag [#allocation6], %s2140_s10 }
  0xcd   : > { %v505_v10 = vpop.f32.mrf.mxu0 }
  0xce   : > { %v506_v11 = vadd.f32 %v1667_v8, %v505_v10  ;;  %v806_v12 = vpop.f32.mrf.mxu1 }
  0xcf   : > { %v807_v13 = vadd.f32 %v1668_v9, %v806_v12 }
  0xd0   : > { %v509_v14 = vpack.c.bf16 %v506_v11, %v506_v11 }
  0xd1   : > { %v810_v15 = vpack.c.bf16 %v807_v13, %v807_v13 }
  0xd2   : > { %515 = vrot.lane.b32.xlu1 %v509_v14, %s1944_s23  ;;  %511 = vrot.lane.b32.xlu0 %v509_v14, %s1945_s9  ;;  %v520_v28 = vshrl.u32 %v509_v14, 16 }
  0xd3   : > { %814 = vrot.lane.b32.xlu2 %v810_v15, %s1946_s13  ;;  %v821_v33 = vshrl.u32 %v810_v15, 16 }
  0xd5   : > { %v507_v16 = vpop.f32.mrf.mxu0 }
  0xd6   : > { %v808_v17 = vpop.f32.mrf.mxu1 }
  0xda   : > { %812 = vrot.lane.b32.xlu1 %v810_v15, %s1945_s9  ;;  %513 = vrot.lane.b32.xlu0 %v509_v14, %s1946_s13  ;;  %s2455_s13 = sld [smem:[#allocation26_spill]] }
  0xdb   : > { %816 = vrot.lane.b32.xlu2 %v810_v15, %s1944_s23 }
  0xe2   : > { %641 = vrot.lane.b32.xlu0 %v509_v14, %s1947_s29 }
 0x12d   : > { %v815_v18 = vpop.permute.xlu2 %814 }
 0x12e   : > { %v827_v20 = vshrl.u32 %v815_v18, 16 }
 0x135   : > { %v817_v19 = vpop.permute.xlu2 %816 }
 0x136   : > { %v828_v23 = vshrl.u32 %v817_v19, 16  ;;  %v826_v32 = vpack.i.b16 %v817_v19, %v815_v18 }
 0x138   : > { %v829_v29 = vpack.i.b16 %v828_v23, %v827_v20  ;;  %v839_v46 = vperm.slane %v826_v32, %v2181_v30 }
 0x13a   : > { %v866_v36 = vperm.slane %v829_v29, %v2181_v30  ;;  %v840_v58 = vrot.slane %v839_v46, 4 }
 0x13c   : > { %v867_v53 = vrot.slane %v866_v36, 4 }
 0x144   : > { %v2175_v21 = vpop.permute.xlu1 %515  ;;  %v2177_v22 = vpop.permute.xlu0 %511 }
 0x145   : > { %v521_v26 = vshrl.u32 %v2177_v22, 16  ;;  %v519_v27 = vpack.i.b16 %v2177_v22, %v509_v14  ;;  %v527_v34 = vshrl.u32 %v2175_v21, 16 }
 0x147   : > { %v522_v31 = vpack.i.b16 %v521_v26, %v520_v28  ;;  %v533_v35 = vperm.slane %v519_v27, %v2181_v30 }
 0x149   : > { %v560_v45 = vperm.slane %v522_v31, %v2181_v30  ;;  %v542_v51 = vrot.slane %v533_v35, 4 }
 0x14b   : > { %v568_v57 = vrot.slane %v560_v45, 4 }
 0x14c   : > { %v813_v39 = vpop.permute.xlu1 %812  ;;  %v2186_v40 = vpop.permute.xlu0 %513 }
 0x14d   : > { %v820_v41 = vpack.i.b16 %v813_v39, %v810_v15  ;;  %v822_v42 = vshrl.u32 %v813_v39, 16  ;;  %v525_v43 = vpack.i.b16 %v2175_v21, %v2186_v40  ;;  %v526_v44 = vshrl.u32 %v2186_v40, 16 }
 0x14f   : > { %v823_v47 = vpack.i.b16 %v822_v42, %v821_v33  ;;  %v834_v48 = vperm.slane %v820_v41, %v2181_v30  ;;  %v528_v49 = vpack.i.b16 %v527_v34, %v526_v44  ;;  %v538_v50 = vperm.slane %v525_v43, %v2181_v30 }
 0x151   : > { %v843_v54 = vrot.slane %v834_v48, 4  ;;  %v861_v55 = vperm.slane %v823_v47, %v2181_v30  ;;  %v539_v56 = vrot.slane %v538_v50, 4  ;;  %v543_v59 = vsel %vm540_vm1, %v538_v50, %v542_v51 }
 0x152   : > { %v565_v60 = vperm.slane %v528_v49, %v2181_v30  ;;  %v842_v1 = vsel %vm540_vm1, %v840_v58, %v834_v48  ;;  %v551_v7 = vperm.slane %v543_v59, %v2195_v52 }
 0x153   : > { %v844_v61 = vsel %vm540_vm1, %v839_v46, %v843_v54  ;;  %v868_v62 = vsel %vm540_vm1, %v867_v53, %v861_v55  ;;  %v869_v63 = vrot.slane %v861_v55, 4  ;;  %v541_v0 = vsel %vm540_vm1, %v539_v56, %v533_v35 }
 0x154   : > { %v852_v2 = vperm.slane %v844_v61, %v2195_v52  ;;  %v874_v3 = vperm.slane %v868_v62, %v2195_v52  ;;  %v547_v4 = vperm.slane %v541_v0, %v2195_v52  ;;  %v566_v8 = vrot.slane %v565_v60, 4 }
 0x155   : > { %v870_v6 = vsel %vm540_vm1, %v866_v36, %v869_v63  ;;  %v569_v9 = vsel %vm540_vm1, %v565_v60, %v568_v57  ;;  %v554_v13 = vrot.slane %v551_v7, 4  ;;  %v848_v16 = vperm.slane %v842_v1, %v2195_v52 }
 0x156   : > { %v855_v10 = vrot.slane %v852_v2, 4  ;;  %v878_v11 = vperm.slane %v870_v6, %v2195_v52  ;;  %v552_v12 = vrot.slane %v547_v4, 4  ;;  %v567_v14 = vsel %vm540_vm1, %v566_v8, %v560_v45 }
 0x157   : > { %v577_v15 = vperm.slane %v569_v9, %v2195_v52  ;;  %v879_v18 = vrot.slane %v874_v3, 4  ;;  %v555_v20 = vsel %vm540_vm1, 0, %v554_v13  ;;  %v573_v23 = vperm.slane %v567_v14, %v2195_v52 }
 0x158   : > { %v881_v17 = vrot.slane %v878_v11, 4  ;;  %v553_v19 = vsel %vm540_vm1, 0, %v552_v12  ;;  %v856_v24 = vsel %vm540_vm1, 0, %v855_v10  ;;  %v587_v27 = vrot.slane %v555_v20, 4 }
 0x159   : > { %v580_v26 = vrot.slane %v577_v15, 4  ;;  %v578_v29 = vrot.slane %v573_v23, 4  ;;  %v582_v31 = vsel %vm540_vm1, %v554_v13, %v547_v4  ;;  %v853_v32 = vrot.slane %v848_v16, 4 }
 0x15a   : > { %v882_v25 = vsel %vm540_vm1, 0, %v881_v17  ;;  %v588_v34 = vsel %vm540_vm1, %v587_v27, %v553_v19  ;;  %v888_v35 = vrot.slane %v856_v24, 4  ;;  %v880_v39 = vsel %vm540_vm1, 0, %v879_v18 }
 0x15b   : > { %v907_v28 = vrot.slane %v882_v25, 4  ;;  %v581_v33 = vsel %vm540_vm1, 0, %v580_v26  ;;  %v579_v36 = vsel %vm540_vm1, 0, %v578_v29  ;;  %v592_v37 = vperm.slane %v588_v34, %v2181_v30 }
 0x15c   : > { %v606_v38 = vrot.slane %v581_v33, 4  ;;  %v586_v41 = vperm.slane %v582_v31, %v2181_v30  ;;  %v601_v43 = vsel %vm540_vm1, %v580_v26, %v573_v23  ;;  %v854_v46 = vsel %vm540_vm1, 0, %v853_v32 }
 0x15d   : > { %v593_v42 = vrot.slane %v592_v37, 4  ;;  %v908_v45 = vsel %vm540_vm1, %v907_v28, %v880_v39  ;;  %v889_v49 = vsel %vm540_vm1, %v888_v35, %v854_v46  ;;  %v605_v51 = vperm.slane %v601_v43, %v2181_v30 }
 0x15e   : > { %v607_v44 = vsel %vm540_vm1, %v606_v38, %v579_v36  ;;  %v912_v54 = vperm.slane %v908_v45, %v2181_v30  ;;  %v893_v57 = vperm.slane %v889_v49, %v2181_v30  ;;  %v902_v59 = vsel %vm540_vm1, %v881_v17, %v874_v3 }
 0x15f   : > { %v611_v47 = vperm.slane %v607_v44, %v2181_v30  ;;  %v594_v48 = vsel %vm540_vm1, %v593_v42, %v586_v41  ;;  %v883_v60 = vsel %vm540_vm1, %v855_v10, %v848_v16  ;;  %v906_v6 = vperm.slane %v902_v59, %v2181_v30 }
 0x160   : > { %v598_v50 = vperm.slane %v594_v48, %v2195_v52  ;;  %v913_v62 = vrot.slane %v912_v54, 4  ;;  %v894_v4 = vrot.slane %v893_v57, 4  ;;  %v887_v3 = vperm.slane %v883_v60, %v2181_v30  ;;  %v642_v54 = vpop.permute.xlu0 %641 }
 0x161   : > { %v612_v53 = vrot.slane %v611_v47, 4 }
 0x162   : > { %v599_v55 = vrot.slane %v598_v50, 4  ;;  %v624_v61 = vshrl.u32 %v598_v50, 16  ;;  %v914_v12 = vsel %vm540_vm1, %v913_v62, %v906_v6  ;;  %v895_v14 = vsel %vm540_vm1, %v894_v4, %v887_v3 }
 0x163   : > { %v613_v56 = vsel %vm540_vm1, %v612_v53, %v605_v51  ;;  %v918_v15 = vperm.slane %v914_v12, %v2195_v52  ;;  %v899_v16 = vperm.slane %v895_v14, %v2195_v52 }
 0x164   : > { %v617_v58 = vperm.slane %v613_v56, %v2195_v52  ;;  %v600_v63 = vsel %vm540_vm1, 0, %v599_v55 }
 0x165   : > { %v632_v10 = vshrl.u32 %v600_v63, 16  ;;  %v919_v19 = vrot.slane %v918_v15, 4  ;;  %v900_v25 = vrot.slane %v899_v16, 4  ;;  %v925_v28 = vshrl.u32 %v918_v15, 16 }
 0x166   : > { %v618_v0 = vrot.slane %v617_v58, 4  ;;  %v622_v1 = vpack.i.b16 %v617_v58, %v598_v50  ;;  %v625_v2 = vshrl.u32 %v617_v58, 16  ;;  %v923_v32 = vpack.i.b16 %v918_v15, %v899_v16 }
 0x167   : > { %v920_v29 = vsel %vm540_vm1, 0, %v919_v19  ;;  %v924_v33 = vshrl.u32 %v899_v16, 16  ;;  %v901_v34 = vsel %vm540_vm1, 0, %v900_v25 }
 0x168   : > { %v619_v7 = vsel %vm540_vm1, 0, %v618_v0  ;;  %v626_v8 = vpack.i.b16 %v625_v2, %v624_v61  ;;  %637 = vst.msk [vmem:[#allocation2] sm:$0xf] %vm636_vm2, %v622_v1  ;;  %v931_v35 = vshrl.u32 %v920_v29, 16  ;;  %v929_v37 = vpack.i.b16 %v920_v29, %v901_v34 }
 0x169   : > { %v630_v9 = vpack.i.b16 %v619_v7, %v600_v63  ;;  %v633_v11 = vshrl.u32 %v619_v7, 16  ;;  %v926_v36 = vpack.i.b16 %v925_v28, %v924_v33  ;;  %v930_v38 = vshrl.u32 %v901_v34, 16 }
 0x16a   : > { %638 = vst.msk [vmem:[#allocation2 + $0x4] sm:$0xf] %vm636_vm2, %v626_v8 }
 0x16b   : > { %v634_v13 = vpack.i.b16 %v633_v11, %v632_v10  ;;  %639 = vst.msk [vmem:[#allocation2 + $0x8] sm:$0xf] %vm636_vm2, %v630_v9  ;;  %v932_v39 = vpack.i.b16 %v931_v35, %v930_v38 }
 0x16d   : > { %640 = vst.msk [vmem:[#allocation2 + $0xc] sm:$0xf] %vm636_vm2, %v634_v13 }
 0x16f   : > { %v933_v17 = vld [vmem:[#allocation2] sm:$0xf] }
 0x170   : > { %v942_v18 = vsel %vm937_vm3, %v933_v17, 0  ;;  %v652_v17 = vshrl.u32 %v642_v54, 16 }
 0x171   : > { %951 = vmatpush.bf16.xpose.msra.mxu2 %v942_v18  ;;  %v934_v20 = vld [vmem:[#allocation2 + $0x4] sm:$0xf] }
 0x172   : > { %v961_v23 = vsel %vm937_vm3, %v934_v20, 0  ;;  %v935_v24 = vld [vmem:[#allocation2 + $0x8] sm:$0xf] }
 0x173   : > { %970 = vmatpush.bf16.xpose.msra.mxu3 %v961_v23  ;;  %v980_v26 = vsel %vm937_vm3, %v935_v24, 0 }
 0x174   : > { %989 = vmatpush.bf16.xpose.msrb.mxu0 %v980_v26  ;;  %v936_v27 = vld [vmem:[#allocation2 + $0xc] sm:$0xf] }
 0x175   : > { %v999_v31 = vsel %vm937_vm3, %v936_v27, 0 }
 0x176   : > { %1008 = vmatpush.bf16.xpose.msrb.mxu1 %v999_v31 }
 0x178   : > { %1529 = vmatmul.msk.bf16.vlgmr.msra.gmra.mxu2 %vm937_vm3, %v923_v32 }
 0x17a   : > { %1530 = vmatmul.msk.bf16.vlgmr.msra.gmra.mxu3 %vm937_vm3, %v926_v36 }
 0x17b   : > { %1531 = vmatmul.msk.bf16.vlgmr.msrb.gmra.mxu0 %vm937_vm3, %v929_v37 }
 0x17d   : > { %1532 = vmatmul.msk.bf16.vlgmr.msrb.gmra.mxu1 %vm937_vm3, %v932_v39 }
 0x1f8   : > { %v991_v41 = vpop.f32.mrf.mxu0 }
 0x1f9   : > { %v1020_v42 = vsel %vm937_vm3, %v991_v41, -inf }
 0x1fa   : > { %v1010_v43 = vpop.f32.mrf.mxu1  ;;  %1021 = vmax.xlane.f32.xlu2 %v1020_v42 }
 0x1fb   : > { %v953_v44 = vpop.f32.mrf.mxu2  ;;  %v1023_v49 = vsel %vm937_vm3, %v1010_v43, -inf }
 0x1fc   : > { %v1014_v45 = vsel %vm937_vm3, %v953_v44, -inf }
 0x1fd   : > { %v972_v46 = vpop.f32.mrf.mxu3  ;;  %1015 = vmax.xlane.f32.xlu0 %v1014_v45 }
 0x1fe   : > { %v1017_v47 = vsel %vm937_vm3, %v972_v46, -inf }
 0x1ff   : > { %1018 = vmax.xlane.f32.xlu1 %v1017_v47 }
 0x200   : > { %v993_v48 = vpop.f32.mrf.mxu0 }
 0x202   : > { %v1012_v50 = vpop.f32.mrf.mxu1  ;;  %1024 = vmax.xlane.f32.xlu2 %v1023_v49 }
 0x203   : > { %v955_v51 = vpop.f32.mrf.mxu2 }
 0x205   : > { %v974_v53 = vpop.f32.mrf.mxu3 }
 0x211   : > { %647 = vrot.lane.b32.xlu0 %v2175_v21, %s1947_s29 }
 0x218   : > { %643 = vrot.lane.b32.xlu1 %v2177_v22, %s1947_s29 }
 0x21a   : > { %645 = vrot.lane.b32.xlu2 %v2186_v40, %s1947_s29  ;;  %s2456_s29 = smov %s2455_s13 }
 0x21b   : > { %s1862_s27 = scalar_lea.hbm %s2456_s29, 16 }
 0x26d   : > { %v1022_v55 = vpop.xlane.xlu2 %1021 }
 0x26e   : > { %v1028_v56 = vsub.f32 %v991_v41, %v1022_v55 }
 0x270   : > { %v1034_v57 = vmul.f32 1.442695, %v1028_v56  ;;  %v1016_v58 = vpop.xlane.xlu0 %1015 }
 0x271   : > { %v1026_v59 = vsub.f32 %v953_v44, %v1016_v58 }
 0x272   : > { %1672 = vpow2.f32 %v1034_v57  ;;  %v1019_v60 = vpop.xlane.xlu1 %1018 }
 0x273   : > { %v1030_v61 = vmul.f32 1.442695, %v1026_v59  ;;  %v1027_v62 = vsub.f32 %v972_v46, %v1019_v60 }
 0x275   : > { %1674 = vpow2.f32 %v1030_v61  ;;  %v1032_v63 = vmul.f32 1.442695, %v1027_v62  ;;  %v1025_v0 = vpop.xlane.xlu2 %1024 }
 0x276   : > { %v1029_v21 = vsub.f32 %v1010_v43, %v1025_v0 }
 0x277   : > { %1676 = vpow2.f32 %v1032_v63 }
 0x278   : > { %v2273_v1 = vpop.eup %1672  ;;  %v1036_v22 = vmul.f32 1.442695, %v1029_v21 }
 0x279   : > { %v1044_v40 = vsel %vm937_vm3, %v2273_v1, 0.0 }
 0x27a   : > { %1045 = vadd.xlane.f32.xlu2 %v1044_v40  ;;  %1678 = vpow2.f32 %v1036_v22 }
 0x27b   : > { %v2277_v2 = vpop.eup %1674 }
 0x27c   : > { %v1038_v4 = vsel %vm937_vm3, %v2277_v2, 0.0 }
 0x27d   : > { %v2281_v6 = vpop.eup %1676  ;;  %1039 = vadd.xlane.f32.xlu1 %v1038_v4  ;;  %v646_v3 = vpop.permute.xlu2 %645 }
 0x27e   : > { %v1041_v7 = vsel %vm937_vm3, %v2281_v6, 0.0  ;;  %v658_v12 = vshrl.u32 %v646_v3, 16 }
 0x27f   : > { %1042 = vadd.xlane.f32.xlu0 %v1041_v7 }
 0x280   : > { %v2285_v8 = vpop.eup %1678 }
 0x281   : > { %v1047_v11 = vsel %vm937_vm3, %v2285_v8, 0.0 }
 0x283   : > { %v648_v9 = vpop.permute.xlu0 %647 }
 0x284   : > { %v659_v10 = vshrl.u32 %v648_v9, 16  ;;  %v657_v13 = vpack.i.b16 %v648_v9, %v646_v3 }
 0x285   : > { %1048 = vadd.xlane.f32.xlu1 %v1047_v11 }
 0x286   : > { %v660_v14 = vpack.i.b16 %v659_v10, %v658_v12  ;;  %v670_v15 = vperm.slane %v657_v13, %v2181_v30 }
 0x288   : > { %v696_v18 = vperm.slane %v660_v14, %v2181_v30  ;;  %v671_v23 = vrot.slane %v670_v15, 4 }
 0x28a   : > { %v644_v16 = vpop.permute.xlu1 %643  ;;  %v697_v26 = vrot.slane %v696_v18, 4 }
 0x28b   : > { %v651_v19 = vpack.i.b16 %v644_v16, %v642_v54  ;;  %v653_v20 = vshrl.u32 %v644_v16, 16 }
 0x28d   : > { %v654_v24 = vpack.i.b16 %v653_v20, %v652_v17  ;;  %v665_v25 = vperm.slane %v651_v19, %v2181_v30 }
 0x28f   : > { %v672_v27 = vsel %vm540_vm1, %v671_v23, %v665_v25  ;;  %v673_v28 = vrot.slane %v665_v25, 4  ;;  %v691_v29 = vperm.slane %v654_v24, %v2181_v30 }
 0x290   : > { %v678_v31 = vperm.slane %v672_v27, %v2195_v52 }
 0x291   : > { %v674_v32 = vsel %vm540_vm1, %v670_v15, %v673_v28  ;;  %v698_v33 = vsel %vm540_vm1, %v697_v26, %v691_v29  ;;  %v699_v34 = vrot.slane %v691_v29, 4 }
 0x292   : > { %v682_v35 = vperm.slane %v674_v32, %v2195_v52  ;;  %v704_v36 = vperm.slane %v698_v33, %v2195_v52  ;;  %v683_v38 = vrot.slane %v678_v31, 4 }
 0x293   : > { %v700_v37 = vsel %vm540_vm1, %v696_v18, %v699_v34 }
 0x294   : > { %v685_v39 = vrot.slane %v682_v35, 4  ;;  %v708_v41 = vperm.slane %v700_v37, %v2195_v52  ;;  %v709_v43 = vrot.slane %v704_v36, 4  ;;  %v684_v46 = vsel %vm540_vm1, 0, %v683_v38 }
 0x296   : > { %v686_v42 = vsel %vm540_vm1, 0, %v685_v39  ;;  %v711_v44 = vrot.slane %v708_v41, 4  ;;  %v713_v48 = vsel %vm540_vm1, %v685_v39, %v678_v31  ;;  %v710_v51 = vsel %vm540_vm1, 0, %v709_v43 }
 0x297   : > { %v718_v45 = vrot.slane %v686_v42, 4  ;;  %v717_v56 = vperm.slane %v713_v48, %v2181_v30 }
 0x298   : > { %v712_v47 = vsel %vm540_vm1, 0, %v711_v44  ;;  %v732_v54 = vsel %vm540_vm1, %v711_v44, %v704_v36 }
 0x299   : > { %v719_v49 = vsel %vm540_vm1, %v718_v45, %v684_v46  ;;  %v737_v50 = vrot.slane %v712_v47, 4  ;;  %v736_v60 = vperm.slane %v732_v54, %v2181_v30 }
 0x29a   : > { %v723_v53 = vperm.slane %v719_v49, %v2181_v30 }
 0x29b   : > { %v738_v55 = vsel %vm540_vm1, %v737_v50, %v710_v51 }
 0x29c   : > { %v724_v57 = vrot.slane %v723_v53, 4  ;;  %v742_v58 = vperm.slane %v738_v55, %v2181_v30 }
 0x29e   : > { %v725_v59 = vsel %vm540_vm1, %v724_v57, %v717_v56  ;;  %v743_v61 = vrot.slane %v742_v58, 4 }
 0x29f   : > { %v729_v62 = vperm.slane %v725_v59, %v2195_v52 }
 0x2a0   : > { %v744_v63 = vsel %vm540_vm1, %v743_v61, %v736_v60 }
 0x2a1   : > { %v730_v0 = vrot.slane %v729_v62, 4  ;;  %v748_v21 = vperm.slane %v744_v63, %v2195_v52  ;;  %v755_v22 = vshrl.u32 %v729_v62, 16 }
 0x2a3   : > { %v731_v40 = vsel %vm540_vm1, 0, %v730_v0  ;;  %v749_v4 = vrot.slane %v748_v21, 4  ;;  %v753_v7 = vpack.i.b16 %v748_v21, %v729_v62  ;;  %v756_v3 = vshrl.u32 %v748_v21, 16 }
 0x2a4   : > { %v763_v12 = vshrl.u32 %v731_v40, 16 }
 0x2a5   : > { %v750_v9 = vsel %vm540_vm1, 0, %v749_v4  ;;  %v757_v10 = vpack.i.b16 %v756_v3, %v755_v22  ;;  %767 = vst.msk [vmem:[#allocation3] sm:$0xf] %vm636_vm2, %v753_v7 }
 0x2a6   : > { %v761_v11 = vpack.i.b16 %v750_v9, %v731_v40  ;;  %v764_v13 = vshrl.u32 %v750_v9, 16 }
 0x2a7   : > { %768 = vst.msk [vmem:[#allocation3 + $0x4] sm:$0xf] %vm636_vm2, %v757_v10 }
 0x2a8   : > { %v765_v14 = vpack.i.b16 %v764_v13, %v763_v12  ;;  %769 = vst.msk [vmem:[#allocation3 + $0x8] sm:$0xf] %vm636_vm2, %v761_v11 }
 0x2aa   : > { %770 = vst.msk [vmem:[#allocation3 + $0xc] sm:$0xf] %vm636_vm2, %v765_v14 }
 0x2ac   : > { %v1062_v15 = vld [vmem:[#allocation3] sm:$0xf] }
 0x2ad   : > { %v1071_v16 = vsel %vm1069_vm4, %v1062_v15, 0 }
 0x2ae   : > { %1080 = vmatpush.bf16.msrb.mxu2 %v1071_v16  ;;  %v1063_v17 = vld [vmem:[#allocation3 + $0x4] sm:$0xf] }
 0x2af   : > { %v1090_v18 = vsel %vm1069_vm4, %v1063_v17, 0  ;;  %v1064_v19 = vld [vmem:[#allocation3 + $0x8] sm:$0xf] }
 0x2b0   : > { %1099 = vmatpush.bf16.msrb.mxu3 %v1090_v18  ;;  %v1109_v20 = vsel %vm1069_vm4, %v1064_v19, 0 }
 0x2b1   : > { %1118 = vmatpush.bf16.msra.mxu0 %v1109_v20  ;;  %v1065_v23 = vld [vmem:[#allocation3 + $0xc] sm:$0xf] }
 0x2b2   : > { %v1128_v24 = vsel %vm1069_vm4, %v1065_v23, 0 }
 0x2b3   : > { %1137 = vmatpush.bf16.msra.mxu1 %v1128_v24 }
 0x2ed   : > { %v1046_v25 = vpop.xlane.xlu2 %1045 }
 0x2ee   : > { %1680 = vrcp.f32 %v1046_v25 }
 0x2f0   : > { %v1040_v26 = vpop.xlane.xlu1 %1039 }
 0x2f1   : > { %1682 = vrcp.f32 %v1040_v26 }
 0x2f2   : > { %v1043_v27 = vpop.xlane.xlu0 %1042 }
 0x2f3   : > { %1684 = vrcp.f32 %v1043_v27 }
 0x2f4   : > { %v1681_v28 = vpop.eup %1680 }
 0x2f5   : > { %v1056_v29 = vmul.f32 %v1681_v28, %v2273_v1 }
 0x2f7   : > { %v1683_v31 = vpop.eup %1682  ;;  %v1060_v32 = vpack.c.bf16 %v1056_v29, %v1056_v29 }
 0x2f8   : > { %v1054_v33 = vmul.f32 %v1683_v31, %v2277_v2  ;;  %v1049_v34 = vpop.xlane.xlu1 %1048 }
 0x2f9   : > { %v1685_v35 = vpop.eup %1684  ;;  %1686 = vrcp.f32 %v1049_v34  ;;  %1535 = vmatmul.msk.bf16.vlgmr.msra.gmra.mxu0 %vm937_vm3, %v1060_v32 }
 0x2fa   : > { %v1055_v36 = vmul.f32 %v1685_v35, %v2281_v6  ;;  %v1058_v37 = vpack.c.bf16 %v1054_v33, %v1054_v33 }
 0x2fc   : > { %1533 = vmatmul.msk.bf16.vlgmr.msrb.gmra.mxu2 %vm937_vm3, %v1058_v37  ;;  %v1059_v38 = vpack.c.bf16 %v1055_v36, %v1055_v36 }
 0x2fe   : > { %1534 = vmatmul.msk.bf16.vlgmr.msrb.gmra.mxu3 %vm937_vm3, %v1059_v38 }
 0x2ff   : > { %v1687_v39 = vpop.eup %1686 }
 0x300   : > { %v1057_v1 = vmul.f32 %v1687_v39, %v2285_v8 }
 0x302   : > { %v1061_v41 = vpack.c.bf16 %v1057_v1, %v1057_v1 }
 0x304   : > { %1536 = vmatmul.msk.bf16.vlgmr.msra.gmra.mxu1 %vm937_vm3, %v1061_v41 }
 0x376   : > { %v1120_v2 = vpop.f32.mrf.mxu0 }
 0x377   : > { %v1145_v43 = vpack.c.bf16 %v1120_v2, %v1120_v2 }
 0x379   : > { %v1156_v49 = vshrl.u32 %v1145_v43, 16 }
 0x37e   : > { %v1122_v42 = vpop.f32.mrf.mxu0 }
 0x37f   : > { %v1082_v44 = vpop.f32.mrf.mxu2 }
 0x380   : > { %v1143_v45 = vpack.c.bf16 %v1082_v44, %v1082_v44 }
 0x381   : > { %v1101_v46 = vpop.f32.mrf.mxu3  ;;  %v1139_v47 = vpop.f32.mrf.mxu1 }
 0x382   : > { %v1144_v6 = vpack.c.bf16 %v1101_v46, %v1101_v46  ;;  %v1146_v48 = vpack.c.bf16 %v1139_v47, %v1139_v47  ;;  %v1150_v50 = vshrl.u32 %v1143_v45, 16 }
 0x384   : > { %v1149_v51 = vpack.i.b16 %v1144_v6, %v1143_v45  ;;  %v1151_v53 = vshrl.u32 %v1144_v6, 16  ;;  %v1155_v54 = vpack.i.b16 %v1146_v48, %v1145_v43  ;;  %v1157_v55 = vshrl.u32 %v1146_v48, 16 }
 0x386   : > { %v1152_v56 = vpack.i.b16 %v1151_v53, %v1150_v50  ;;  %v1163_v8 = vperm.slane %v1149_v51, %v2181_v30  ;;  %v1158_v57 = vpack.i.b16 %v1157_v55, %v1156_v49  ;;  %v1168_v58 = vperm.slane %v1155_v54, %v2181_v30 }
 0x387   : > { %v1084_v59 = vpop.f32.mrf.mxu2 }
 0x388   : > { %v1171_v60 = vrot.slane %v1163_v8, 4  ;;  %v1189_v61 = vperm.slane %v1152_v56, %v2181_v30  ;;  %v1169_v62 = vrot.slane %v1168_v58, 4  ;;  %v1194_v63 = vperm.slane %v1158_v57, %v2181_v30  ;;  %v1555_v56 = vld [vmem:[#allocation12 + $0x8] sm:$0xff] }
 0x389   : > { %v1103_v0 = vpop.f32.mrf.mxu3  ;;  %v1141_v21 = vpop.f32.mrf.mxu1  ;;  %1310 = vmatpush.bf16.msra.mxu2 %v1555_v56 }
 0x38a   : > { %v1197_v22 = vrot.slane %v1189_v61, 4  ;;  %v1170_v40 = vsel %vm540_vm1, %v1169_v62, %v1163_v8  ;;  %v1172_v4 = vsel %vm540_vm1, %v1168_v58, %v1171_v60  ;;  %v1195_v7 = vrot.slane %v1194_v63, 4  ;;  %v1554_v8 = vld [vmem:[#allocation12] sm:$0xff] }
 0x38b   : > { %v1176_v3 = vperm.slane %v1170_v40, %v2195_v52  ;;  %v1180_v9 = vperm.slane %v1172_v4, %v2195_v52 }
 0x38c   : > { %v1196_v10 = vsel %vm540_vm1, %v1195_v7, %v1189_v61  ;;  %v1198_v11 = vsel %vm540_vm1, %v1194_v63, %v1197_v22  ;;  %v1669_v63 = vld [vmem:[%s2424_s7] ss:$0 sm:$0xff]  ;;  %v1953_v7 = vmov 32.0  }
 0x38d   : > { %v1181_v12 = vrot.slane %v1176_v3, 4  ;;  %v1183_v13 = vrot.slane %v1180_v9, 4  ;;  %v1202_v14 = vperm.slane %v1196_v10, %v2195_v52  ;;  %v1206_v15 = vperm.slane %v1198_v11, %v2195_v52  ;;  %1311 = vmatpush.bf16.msra.mxu2 %v1554_v8 }
 0x38e   : > { %1688 = vrcp.f32 %v1953_v7 }
 0x38f   : > { %v1184_v16 = vsel %vm540_vm1, 0, %v1183_v13  ;;  %v1207_v17 = vrot.slane %v1202_v14, 4  ;;  %v1209_v18 = vrot.slane %v1206_v15, 4  ;;  %v1182_v20 = vsel %vm540_vm1, 0, %v1181_v12 }
 0x390   : > { %v1216_v19 = vrot.slane %v1184_v16, 4  ;;  %v1211_v24 = vsel %vm540_vm1, %v1183_v13, %v1176_v3 }
 0x391   : > { %v1210_v23 = vsel %vm540_vm1, 0, %v1209_v18  ;;  %v1208_v27 = vsel %vm540_vm1, 0, %v1207_v17  ;;  %v1230_v29 = vsel %vm540_vm1, %v1209_v18, %v1202_v14  ;;  %v1215_v32 = vperm.slane %v1211_v24, %v2181_v30 }
 0x392   : > { %v1217_v25 = vsel %vm540_vm1, %v1216_v19, %v1182_v20  ;;  %v1235_v26 = vrot.slane %v1210_v23, 4  ;;  %v1234_v36 = vperm.slane %v1230_v29, %v2181_v30  ;;  %v1670_v29 = vld [vmem:[%s2453_s25] ss:$0 sm:$0xff] }
 0x393   : > { %v1221_v28 = vperm.slane %v1217_v25, %v2181_v30 }
 0x394   : > { %v1236_v31 = vsel %vm540_vm1, %v1235_v26, %v1208_v27  ;;  %v1689_v3 = vpop.eup %1688 }
 0x395   : > { %v1222_v33 = vrot.slane %v1221_v28, 4  ;;  %v1240_v34 = vperm.slane %v1236_v31, %v2181_v30  ;;  %v1322_v9 = vmul.f32 32.0, %v1689_v3  ;;  %vm1326_vm7 = vweird.f32 %v1689_v3 }
 0x397   : > { %v1223_v35 = vsel %vm540_vm1, %v1222_v33, %v1215_v32  ;;  %v1241_v37 = vrot.slane %v1240_v34, 4  ;;  %v1323_v10 = vsub.f32 1.0, %v1322_v9  ;;  %v1671_v33 = vld [vmem:[%s2457_s12] ss:$0 sm:$0xff] }
 0x398   : > { %v1227_v38 = vperm.slane %v1223_v35, %v2195_v52 }
 0x399   : > { %v1242_v39 = vsel %vm540_vm1, %v1241_v37, %v1234_v36  ;;  %v1324_v11 = vmul.f32 %v1689_v3, %v1323_v10 }
 0x39a   : > { %v1246_v1 = vperm.slane %v1242_v39, %v2195_v52  ;;  %v1228_v41 = vrot.slane %v1227_v38, 4  ;;  %v1252_v2 = vshrl.u32 %v1227_v38, 16 }
 0x39b   : > { %v1325_v12 = vadd.f32 %v1689_v3, %v1324_v11 }
 0x39c   : > { %v1253_v42 = vshrl.u32 %v1246_v1, 16  ;;  %v1229_v43 = vsel %vm540_vm1, 0, %v1228_v41  ;;  %v1247_v44 = vrot.slane %v1246_v1, 4  ;;  %v1251_v45 = vpack.i.b16 %v1246_v1, %v1227_v38 }
 0x39d   : > { %v1258_v48 = vshrl.u32 %v1229_v43, 16  ;;  %v1327_v13 = vsel %vm1326_vm7, %v1689_v3, %v1325_v12 }
 0x39e   : > { %v1254_v46 = vpack.i.b16 %v1253_v42, %v1252_v2  ;;  %v1248_v47 = vsel %vm540_vm1, 0, %v1247_v44 }
 0x39f   : > { %v1257_v6 = vpack.i.b16 %v1248_v47, %v1229_v43  ;;  %v1259_v30 = vshrl.u32 %v1248_v47, 16 }
 0x3a0   : > { %v1261_v49 = vunpack.c.l.b16 %v1254_v46 }
 0x3a1   : > { %v1265_v50 = vunpack.c.l.b16 %v1257_v6  ;;  %v1260_v51 = vpack.i.b16 %v1259_v30, %v1258_v48 }
 0x3a2   : > { %v1262_v53 = vpack.c.b16 %v1261_v49, %v1261_v49 }
 0x3a3   : > { %v1266_v54 = vpack.c.b16 %v1265_v50, %v1265_v50  ;;  %v1269_v55 = vunpack.c.l.b16 %v1260_v51 }
 0x3a4   : > { %1263 = vrot.lane.b32.xlu0 %v1262_v53, %s1950_s11  ;;  %s1370_s11 = scalar_lea.hbm %s2455_s13, %s2454_s30 }
 0x3a5   : > { %1267 = vrot.lane.b32.xlu2 %v1266_v54, %s1951_s8  ;;  %v1270_v52 = vpack.c.b16 %v1269_v55, %v1269_v55  ;;  %s1374_s1 = sshll.u32 %s1370_s11, 4  ;;  %s1375_s1 = int_to_ptr.hbm [resolvable:$true] %s1374_s1 }
 0x3a6   : > { %s1856_s21 = sshra.s32 %s1375_s1, 4  ;;  %s1857_s21 = int_to_ptr.hbm [resolvable:$true] %s1856_s21 }
 0x3a7   : > { %1271 = vrot.lane.b32.xlu1 %v1270_v52, %s1952_s16  ;;  %s1858_s22 = scalar_lea.hbm %s1857_s21, 8  ;;  %p1863_p8 = scmp.lt.s32.totalorder %s1857_s21, %s2456_s29 }
 0x3a8   : > { %p1859_p1 = scmp.ne.s32.totalorder %s1857_s21, %s1858_s22  ;;  %p1864_p5 = scmp.lt.s32.totalorder %s1862_s27, %s1858_s22 }
 0x3aa   : > { %p1860_p3 = pnand %p1859_p1, %p2120_p0  ;;  %p1865_p9 = por %p1864_p5, %p1863_p8 }
 0x3ac   : > { %p1861_p7 = pneg %p1860_p3 }
 0x3ae   : > { %p1866_p12 = pnand %p1865_p9, %p1861_p7 }
 0x3ff   : > { %v1268_v58 = vpop.permute.xlu2 %1267 }
 0x416   : > { %v1264_v57 = vpop.permute.xlu0 %1263 }
 0x417   : > { %v1275_v59 = vsel %vm937_vm3, %v1251_v45, %v1264_v57 }
 0x418   : > { %v1278_v60 = vsel %vm1276_vm5, %v1275_v59, %v1268_v58 }
 0x419   : > { %v1272_v61 = vpop.permute.xlu1 %1271 }
 0x41a   : > { %v1281_v62 = vsel %vm1279_vm6, %v1278_v60, %v1272_v61 }
 0x41b   : > { %1545 = vmatmul.msk.bf16.vlgmr.msra.gmra.mxu2 %vm492_vm0, %v1281_v62 }
 0x49e   : > { %v1313_v0 = vpop.f32.mrf.mxu2 }
 0x49f   : > { %v1314_v21 = vadd.f32 %v1669_v63, %v1313_v0 }
 0x4a1   : > { %v1317_v22 = vadd.f32 %v1314_v21, %v2162_v5 }
 0x4a3   : > { %v1318_v40 = vsel %vm492_vm0, %v1317_v22, 0.0 }
 0x4a4   : > { %1319 = vadd.xlane.f32.xlu0 %v1318_v40 }
 0x4a6   : > { %v1315_v4 = vpop.f32.mrf.mxu2 }
 0x517   : > { %v1320_v14 = vpop.xlane.xlu0 %1319 }
 0x518   : > { %v1328_v15 = vmul.f32 %v1327_v13, %v1320_v14 }
 0x51a   : > { %v1329_v16 = vsub.f32 %v1317_v22, %v1328_v15 }
 0x51c   : > { %v1330_v17 = vmul.f32 %v1329_v16, %v1329_v16 }
 0x51e   : > { %v1331_v18 = vsel %vm492_vm0, %v1330_v17, 0.0 }
 0x51f   : > { %1332 = vadd.xlane.f32.xlu2 %v1331_v18 }
 0x592   : > { %v1333_v5 = vpop.xlane.xlu2 %1332 }
 0x593   : > { %v1334_v19 = vmul.f32 %v1333_v5, %v1327_v13 }
 0x595   : > { %v1335_v20 = vadd.f32 1e-05, %v1334_v19 }
 0x597   : > { %1690 = vrsqrt.f32 %v1335_v20  ;;  %vm1342_vm9 = vweird.f32 %v1335_v20 }
 0x59d   : > { %v1691_v23 = vpop.eup %1690 }
 0x59e   : > { %v1337_v24 = vmul.f32 %v1691_v23, %v1335_v20  ;;  %vm1343_vm8 = vweird.f32 %v1691_v23 }
 0x59f   : > { %vm1344_vm10 = vmor %vm1342_vm9, %vm1343_vm8 }
 0x5a0   : > { %v1338_v25 = vmul.f32 %v1691_v23, %v1337_v24 }
 0x5a2   : > { %v1339_v26 = vmul.f32 0.5, %v1338_v25 }
 0x5a4   : > { %v1340_v27 = vsub.f32 1.5, %v1339_v26 }
 0x5a6   : > { %v1341_v28 = vmul.f32 %v1691_v23, %v1340_v27 }
 0x5a8   : > { %v1345_v31 = vsel %vm1344_vm10, %v1691_v23, %v1341_v28 }
 0x5a9   : > { %v1346_v32 = vmul.f32 %v1345_v31, %v1329_v16 }
 0x5ab   : > { %v1351_v34 = vmul.f32 %v1670_v29, %v1346_v32 }
 0x5ad   : > { %v1356_v35 = vadd.f32 %v1671_v33, %v1351_v34 }
 0x5af   : > { %1357 = vst.msk [vmem:[%s464_s20] sm:$0xff] %vm492_vm0, %v1356_v35 }
 0x5b0   : > { %1869 = shalt.err (!%p1866_p12)
}
 0x5b1   : > { %1572 = dma.vmem_to_hbm [thread:$0]  (%p2120_p0), %s1373_s0, 128, %s1375_s1, %s1359_s19  }
 0x5b2 PF: > { %s2458_s10 = sld [smem:[#allocation19_spill]] }
 0x5b3   : > { %s2459_s13 = sld [smem:[#allocation21_spill]] }
 0x5b8   : > { %s1386_s11 = sand.u32 1, %s2458_s10  }
 0x5b9   : > { %p2460_p13 = scmp.ne.s32.totalorder %s2459_s13, 0  ;;  %s1387_s8 = scalar_lea.sflag [#allocation6], %s1386_s11 }
 0x5bb   : > { %p1592_p2 = pnand %p1502_p11, %p2460_p13 }
 0x5bd   : > { %p1593_p10 = pneg %p1592_p2 }
 0x5bf   : > { %1911 = dma.done.wait (%p1593_p10), %s1387_s8, 128  }
 0x5c0   : > { %1913 = vsyncadd (%p1593_p10), %s1387_s8, 4294967168  ;;  %s28_s18 = sadd.s32 1, %s1936_s18   ;;  %s2461_s13 = smov %s1920_s14 }
 0x5c1   : > { %p25_p4 = scmp.ge.s32.totalorder %s28_s18, 4   ;;  %s2462_s14 = smov %s1924_s15 }
 0x5c2   : > { %s2463_s15 = smov %s2130_s24  ;;  %s2464_s16 = smov %s1932_s17 }
 0x5c3   : > { %s2465_s17 = smov %s2467_s26  ;;  %27 = sbr.rel (!%p25_p4) target bundleno = 14 (0xe), region = 126 }
 0x5c8   :  { %1393 = vsyncpa [#allocation5], 1 }
 0x5c9   :  { %1395 = vsyncpa [#allocation5 + $0x1], 1 }
 0x5ca   :  { %1396 = vsyncpa [#allocation8], 1 }
 0x5cb   :  { %1397 = vsyncpa [#allocation11], 1 }
 0x5cc   :  { %1398 = vsyncpa [#allocation6], 1 }
 0x5cd   :  { %1400 = vsyncpa [#allocation6 + $0x1], 1 }

</bundles_post_ra>
